<compile_context>
chip_gen: v7x
topology: tpu7x:2x2x1
jax: 0.10.0
libtpu: 0.0.40
codegen_flags: <defaults>
</compile_context>

<pallas_src>
import functools

import jax
import jax.numpy as jnp
from jax import lax
from jax.experimental import pallas as pl
from jax.experimental.pallas import tpu as pltpu

LANE = 128
SUBLANE = 8


def _round_up(x, m):
    return (x + m - 1) // m * m


def _pad2d(x, rows, cols):
    r, c = x.shape
    return jnp.pad(x, ((0, rows - r), (0, cols - c)))


def _pick_row_tile(n_pad, requested):
    for cand in (512, 256, 128):
        if cand <= requested and n_pad % cand == 0:
            return cand
    return n_pad


def _vmem_budget_bytes():
    """~85% of physical VMEM (128 MiB v5e/v6e, 64 MiB per TC on v7x)."""
    try:
        info = pltpu.get_tpu_info()
        cap = int(getattr(info, "vmem_capacity_bytes", 64 << 20))
    except Exception:
        cap = 64 << 20
    return int(cap * 0.85)


def _prop_resident_fits(n_pad, d_pad, budget):
    a_bytes = 2 * n_pad * n_pad * 2          # bf16 A (conservative: 2 buffers)
    h_bytes = 2 * n_pad * d_pad * 4          # f32 h0
    out_bytes = 2 * n_pad * d_pad * 4        # f32 output
    work = 3 * n_pad * d_pad * 4             # fori carry + temporaries
    return (a_bytes + h_bytes + out_bytes + work) <= budget


# ----------------------------------------------------------------------------
# Kernels
# ----------------------------------------------------------------------------
def _fused_mlp_kernel(*refs, num_layers):
    """One row-tile of the whole Linear(+ReLU) chain.

    refs = (x, w0, b0, ..., w_{L-1}, b_{L-1}, out0, ..., out_{L-1})
    x / weights are bf16 (lane-padded, weights pre-transposed to (in, out));
    biases and outputs are f32. out_l for l < L-1 is the pre-activation hidden
    (h_list entry), out_{L-1} is the final linear output (no activation).
    """
    x_ref = refs[0]
    w_refs = refs[1:1 + 2 * num_layers]
    out_refs = refs[1 + 2 * num_layers:]

    h = x_ref[...]                                  # bf16 row tile
    for l in range(num_layers):
        w = w_refs[2 * l][...]                      # bf16 (in_pad, out_pad)
        b = w_refs[2 * l + 1][...]                  # f32  (1, out_pad)
        pre = jnp.dot(h, w, preferred_element_type=jnp.float32) + b
        out_refs[l][...] = pre
        if l != num_layers - 1:
            # activation (ReLU); dropout = identity in eval mode.
            h = jnp.maximum(pre, 0.0).astype(jnp.bfloat16)


def _appnp_prop_resident_kernel(a_ref, h0_ref, o_ref, *, k, alpha):
    """Whole propagation with A_hat resident in VMEM (single grid step).

    a_ref already carries the (1-alpha) factor (folded on the host) and is
    bf16; h0_ref / o_ref are f32.  h^{t+1} = a_ref @ h^t + alpha*h0.
    """
    def body(_, h):
        prod = jnp.dot(a_ref[...], h.astype(jnp.bfloat16),
                       preferred_element_type=jnp.float32)
        return prod + alpha * h0_ref[...]

    o_ref[...] = lax.fori_loop(0, k, body, h0_ref[...])


def _appnp_prop_streamed_kernel(a_ref, h0_ref, o_ref, hbuf, *, alpha, row_tile):
    """APPNP propagation, grid = (k, n_row_tiles), A_hat streamed from HBM.

    h^{t+1}[rows] = ((1-alpha)*A_hat)[rows, :] @ h^t + alpha * h0[rows]

    A row tiles (row_tile, N_pad, bf16, pre-scaled by (1-alpha)) are streamed
    via BlockSpec pipelining; h lives in a bf16 VMEM ping-pong scratch (no
    per-step recast of the resident h); o_ref is a resident full (N_pad, d_pad)
    f32 block written only on the last power-iteration step.
    """
    ki = pl.program_id(0)
    ri = pl.program_id(1)

    @pl.when((ki == 0) & (ri == 0))
    def _():
        hbuf[0] = h0_ref[...].astype(jnp.bfloat16)

    read_slot = lax.rem(ki, 2)
    prod = jnp.dot(a_ref[...], hbuf[read_slot],
                   preferred_element_type=jnp.float32)

    row0 = pl.multiple_of(ri * row_tile, row_tile)
    new_tile = prod + alpha * h0_ref[pl.ds(row0, row_tile), :]

    hbuf[1 - read_slot, pl.ds(row0, row_tile), :] = new_tile.astype(jnp.bfloat16)

    @pl.when(ki == pl.num_programs(0) - 1)
    def _():
        o_ref[pl.ds(row0, row_tile), :] = new_tile


# ----------------------------------------------------------------------------
# Wrappers (pallas_call plumbing)
# ----------------------------------------------------------------------------
def pallas_fused_mlp(x, params, *, row_tile=512, vmem_limit=None):
    """Run the whole Linear(+ReLU) chain in one pallas_call.

    Returns (outs, n_pad) where outs is a tuple of padded per-layer outputs,
    each (n_pad, out_pad) f32: pre-activation hiddens for layers 0..L-2 and the
    final linear output last.
    """
    n, in_dim = x.shape
    num_layers = len(params)
    n_pad = _round_up(max(n, SUBLANE), LANE)
    tile = _pick_row_tile(n_pad, row_tile)
    in_pad = _round_up(in_dim, LANE)
    if vmem_limit is None:
        vmem_limit = _vmem_budget_bytes()

    x_p = _pad2d(x, n_pad, in_pad).astype(jnp.bfloat16)

    w_args = []
    out_dims = []
    for (w, b) in params:
        out_dim, fin = w.shape
        fin_p = _round_up(fin, LANE)
        fout_p = _round_up(out_dim, LANE)
        w_args.append(_pad2d(w.T, fin_p, fout_p).astype(jnp.bfloat16))  # (in,out)
        w_args.append(_pad2d(b.astype(jnp.float32), 1, fout_p))
        out_dims.append(fout_p)

    in_specs = [pl.BlockSpec((tile, in_pad), lambda i: (i, 0))]
    for t in w_args:
        # Weights/biases resident across row tiles (block index never changes).
        in_specs.append(pl.BlockSpec(t.shape, lambda i: (0, 0)))

    out_shape = tuple(jax.ShapeDtypeStruct((n_pad, d), jnp.float32)
                      for d in out_dims)
    out_specs = tuple(pl.BlockSpec((tile, d), lambda i: (i, 0))
                      for d in out_dims)

    flops = 2 * n_pad * sum(int(w.shape[0]) * int(w.shape[1])
                            for w in w_args[0::2])
    bytes_accessed = (int(x_p.size) * 2
                      + sum(int(t.size) * t.dtype.itemsize for t in w_args)
                      + sum(n_pad * d * 4 for d in out_dims))

    outs = pl.pallas_call(
        functools.partial(_fused_mlp_kernel, num_layers=num_layers),
        out_shape=out_shape,
        grid=(n_pad // tile,),
        in_specs=in_specs,
        out_specs=out_specs,
        compiler_params=pltpu.CompilerParams(
            dimension_semantics=("parallel",),
            vmem_limit_bytes=int(vmem_limit)),
        cost_estimate=pl.CostEstimate(flops=int(flops), transcendentals=0,
                                      bytes_accessed=int(bytes_accessed)),
    )(x_p, *w_args)
    return outs, n_pad


def pallas_appnp_propagate(a_hat, h, *, k, alpha, row_tile=256,
                           force_streamed=False, vmem_limit=None):
    """APPNP propagation. a_hat: (N, N) dense normalized adjacency, h: (N, d)."""
    n, d = h.shape
    if k == 0:
        return h
    n_pad = _round_up(max(n, SUBLANE), LANE)
    d_pad = _round_up(d, LANE)
    if vmem_limit is None:
        vmem_limit = _vmem_budget_bytes()

    # Fold (1 - alpha) into the host-side pad + bf16 cast of A_hat (dominant
    # operand; f32 MXU accumulation in-kernel).
    a_p = _pad2d((1.0 - float(alpha)) * a_hat, n_pad, n_pad).astype(jnp.bfloat16)
    h_p = _pad2d(h.astype(jnp.float32), n_pad, d_pad)

    resident = (not force_streamed) and _prop_resident_fits(n_pad, d_pad,
                                                            vmem_limit)
    flops = 2 * k * n_pad * n_pad * d_pad

    if resident:
        # A_hat DMA'd once; whole k-loop in VMEM; single output writeback.
        bytes_accessed = n_pad * n_pad * 2 + 2 * n_pad * d_pad * 4
        out = pl.pallas_call(
            functools.partial(_appnp_prop_resident_kernel, k=int(k),
                              alpha=float(alpha)),
            out_shape=jax.ShapeDtypeStruct((n_pad, d_pad), jnp.float32),
            grid=(1,),
            in_specs=[
                pl.BlockSpec((n_pad, n_pad), lambda i: (0, 0)),
                pl.BlockSpec((n_pad, d_pad), lambda i: (0, 0)),
            ],
            out_specs=pl.BlockSpec((n_pad, d_pad), lambda i: (0, 0)),
            compiler_params=pltpu.CompilerParams(
                dimension_semantics=("arbitrary",),
                vmem_limit_bytes=int(vmem_limit)),
            cost_estimate=pl.CostEstimate(flops=int(flops), transcendentals=0,
                                          bytes_accessed=int(bytes_accessed)),
        )(a_p, h_p)
    else:
        # Large-N fallback: stream A row tiles every power-iteration step.
        tile = _pick_row_tile(n_pad, row_tile)
        n_tiles = n_pad // tile
        bytes_accessed = k * n_pad * n_pad * 2 + 2 * n_pad * d_pad * 4
        out = pl.pallas_call(
            functools.partial(_appnp_prop_streamed_kernel, alpha=float(alpha),
                              row_tile=tile),
            out_shape=jax.ShapeDtypeStruct((n_pad, d_pad), jnp.float32),
            grid=(k, n_tiles),
            in_specs=[
                # A row tiles, re-streamed each power-iteration step.
                pl.BlockSpec((tile, n_pad), lambda ki, ri: (ri, 0)),
                # h0 resident (block index never changes -> single DMA).
                pl.BlockSpec((n_pad, d_pad), lambda ki, ri: (0, 0)),
            ],
            # Resident output: written in-kernel only at ki == k-1, single
            # HBM writeback at the end of the grid.
            out_specs=pl.BlockSpec((n_pad, d_pad), lambda ki, ri: (0, 0)),
            scratch_shapes=[
                pltpu.VMEM((2, n_pad, d_pad), jnp.bfloat16),   # ping-pong h
            ],
            # Row tiles share the resident-h scratch carried across k, so both
            # axes must stay "arbitrary" (sequential execution required).
            compiler_params=pltpu.CompilerParams(
                dimension_semantics=("arbitrary", "arbitrary"),
                vmem_limit_bytes=int(vmem_limit)),
            cost_estimate=pl.CostEstimate(flops=int(flops), transcendentals=0,
                                          bytes_accessed=int(bytes_accessed)),
        )(a_p, h_p)
    return out[:n, :d]


# ----------------------------------------------------------------------------
# APPNP model (parameter init + forward orchestration; hot path in Pallas)
# ----------------------------------------------------------------------------
def init_appnp_params(key, num_layers, input_dim, hidden_dim, output_dim):
    """PyTorch-Linear-style uniform init: U(-1/sqrt(fan_in), +1/sqrt(fan_in))."""
    dims = []
    if num_layers == 1:
        dims.append((input_dim, output_dim))
    else:
        dims.append((input_dim, hidden_dim))
        for _ in range(num_layers - 2):
            dims.append((hidden_dim, hidden_dim))
        dims.append((hidden_dim, output_dim))

    params = []
    for (fan_in, fan_out) in dims:
        key, kw, kb = jax.random.split(key, 3)
        bound = 1.0 / jnp.sqrt(jnp.asarray(fan_in, jnp.float32))
        w = jax.random.uniform(kw, (fan_out, fan_in), jnp.float32,
                               minval=-bound, maxval=bound)
        b = jax.random.uniform(kb, (1, fan_out), jnp.float32,
                               minval=-bound, maxval=bound)
        params.append((w, b))
    return params


def appnp_forward(a_hat, feats, params, *, k=10, alpha=0.1):
    """Returns (h_list, h) mirroring the PyTorch module's forward (eval mode)."""
    n = feats.shape[0]
    num_layers = len(params)
    # TODO(synk): training-mode feature dropout / APPNPConv edge_drop and
    # norm_type='batch'/'layer' are not implemented (identity / unused at
    # inference with norm_type='none', which is the semantics reproduced here).
    outs, _ = pallas_fused_mlp(feats, params)
    h_list = [outs[l][:n, :params[l][0].shape[0]] for l in range(num_layers - 1)]
    h_mlp = outs[num_layers - 1][:n, :params[-1][0].shape[0]]
    h = pallas_appnp_propagate(a_hat, h_mlp, k=k, alpha=alpha)
    return h_list, h


def build_normalized_adjacency(key, n):
    """Dense symmetric random graph with self loops, D^-1/2 (A+I) D^-1/2."""
    logits = jax.random.uniform(key, (n, n))
    adj = (logits > 0.7).astype(jnp.float32)
    adj = jnp.maximum(adj, adj.T)                       # symmetrize
    adj = adj + jnp.eye(n, dtype=jnp.float32)           # self loops
    deg = jnp.sum(adj, axis=1)
    d_inv_sqrt = 1.0 / jnp.sqrt(deg)
    return adj * d_inv_sqrt[:, None] * d_inv_sqrt[None, :]


if __name__ == "__main__":
    # Small shapes: N=64 nodes, input_dim=16, hidden_dim=32, output_dim=8.
    num_layers = 2
    n_nodes, input_dim, hidden_dim, output_dim = 64, 16, 32, 8
    k_steps, alpha = 10, 0.1

    root = jax.random.PRNGKey(0)
    k_feat, k_graph, k_param = jax.random.split(root, 3)

    feats = jax.random.normal(k_feat, (n_nodes, input_dim), jnp.float32)
    a_hat = build_normalized_adjacency(k_graph, n_nodes)
    params = init_appnp_params(k_param, num_layers, input_dim, hidden_dim,
                               output_dim)

    h_list, h = appnp_forward(a_hat, feats, params, k=k_steps, alpha=alpha)
    jax.block_until_ready(h)
    for t in h_list:
        jax.block_until_ready(t)

    # ---- plain-JAX reference mirroring the kernels' numerics
    #      (bf16 MXU operands, f32 accumulation, (1-alpha) folded into A) ----
    pre_refs = []
    ref = feats
    for l, (w, b) in enumerate(params):
        pre = (jnp.dot(ref.astype(jnp.bfloat16), w.T.astype(jnp.bfloat16),
                       preferred_element_type=jnp.float32) + b)
        if l != num_layers - 1:
            pre_refs.append(pre)
            ref = jnp.maximum(pre, 0.0)
        else:
            ref = pre
    h0_ref = ref
    a_bf = ((1.0 - alpha) * a_hat).astype(jnp.bfloat16)
    hp = h0_ref
    for _ in range(k_steps):
        hp = (jnp.dot(a_bf, hp.astype(jnp.bfloat16),
                      preferred_element_type=jnp.float32) + alpha * h0_ref)

    assert h.shape == (n_nodes, output_dim)
    assert h_list[0].shape == (n_nodes, hidden_dim)
    assert jnp.allclose(h_list[0], pre_refs[0], atol=5e-4, rtol=5e-4)
    assert jnp.allclose(h, hp, atol=2e-3, rtol=2e-3)

    # Also exercise the streamed (large-N fallback) propagation path and check
    # it matches the reference / resident path.
    h_streamed = pallas_appnp_propagate(a_hat, h0_ref, k=k_steps, alpha=alpha,
                                        force_streamed=True)
    jax.block_until_ready(h_streamed)
    assert jnp.allclose(h_streamed, hp, atol=2e-3, rtol=2e-3)

    print("KERNEL_OK")
</pallas_src>

<mosaic_0001>
module attributes {stable_mosaic.version = 11 : i64} {
  func.func @_fused_mlp_kernel(%arg0: i32, %arg1: memref<128x128xbf16, #tpu.memory_space<vmem>>, %arg2: memref<128x128xbf16, #tpu.memory_space<vmem>>, %arg3: memref<1x128xf32, #tpu.memory_space<vmem>>, %arg4: memref<128x128xbf16, #tpu.memory_space<vmem>>, %arg5: memref<1x128xf32, #tpu.memory_space<vmem>>, %arg6: memref<128x128xf32, #tpu.memory_space<vmem>>, %arg7: memref<128x128xf32, #tpu.memory_space<vmem>>) attributes {dimension_semantics = [#tpu.dimension_semantics<parallel>], iteration_bounds = array<i64: 1>, scalar_prefetch = 0 : i64, scratch_operands = 0 : i64, tpu.core_type = #tpu.core_type<tc>, window_params = [{transform_indices = @transform_0, window_bounds = array<i64: 128, 128>}, {pipeline_mode = #tpu.pipeline_mode<synchronous>, transform_indices = @transform_1, window_bounds = array<i64: 128, 128>}, {pipeline_mode = #tpu.pipeline_mode<synchronous>, transform_indices = @transform_2, window_bounds = array<i64: 1, 128>}, {pipeline_mode = #tpu.pipeline_mode<synchronous>, transform_indices = @transform_3, window_bounds = array<i64: 128, 128>}, {pipeline_mode = #tpu.pipeline_mode<synchronous>, transform_indices = @transform_4, window_bounds = array<i64: 1, 128>}, {transform_indices = @transform_5, window_bounds = array<i64: 128, 128>}, {transform_indices = @transform_6, window_bounds = array<i64: 128, 128>}]} {
    %c0 = arith.constant 0 : index
    %c0_0 = arith.constant 0 : index
    %0 = vector.load %arg1[%c0, %c0_0] : memref<128x128xbf16, #tpu.memory_space<vmem>>, vector<128x128xbf16>
    %c0_1 = arith.constant 0 : index
    %c0_2 = arith.constant 0 : index
    %1 = vector.load %arg2[%c0_1, %c0_2] : memref<128x128xbf16, #tpu.memory_space<vmem>>, vector<128x128xbf16>
    %c0_3 = arith.constant 0 : index
    %c0_4 = arith.constant 0 : index
    %2 = vector.load %arg3[%c0_3, %c0_4] : memref<1x128xf32, #tpu.memory_space<vmem>>, vector<1x128xf32>
    %cst = arith.constant dense<0.000000e+00> : vector<128x128xf32>
    %3 = tpu.matmul %0, %1, %cst {dimension_numbers = #tpu.dot_dimension_numbers<[1], [0], [0], [1], [0, 0, 1, 1], [], []>} : vector<128x128xbf16>, vector<128x128xbf16>, vector<128x128xf32> -> vector<128x128xf32>
    %4 = vector.broadcast %2 : vector<1x128xf32> to vector<128x128xf32>
    %5 = arith.addf %3, %4 : vector<128x128xf32>
    %c0_5 = arith.constant 0 : index
    %c0_6 = arith.constant 0 : index
    %6 = vector.load %arg6[%c0_5, %c0_6] : memref<128x128xf32, #tpu.memory_space<vmem>>, vector<128x128xf32>
    tpu.vector_store %arg6[%c0_5, %c0_6], %5 {strides = array<i32>} : memref<128x128xf32, #tpu.memory_space<vmem>>, vector<128x128xf32>,
    %cst_7 = arith.constant 0.000000e+00 : f32
    %7 = vector.broadcast %cst_7 : f32 to vector<128x128xf32>
    %8 = arith.maximumf %5, %7 : vector<128x128xf32>
    %9 = arith.truncf %8 : vector<128x128xf32> to vector<128x128xbf16>
    %c0_8 = arith.constant 0 : index
    %c0_9 = arith.constant 0 : index
    %10 = vector.load %arg4[%c0_8, %c0_9] : memref<128x128xbf16, #tpu.memory_space<vmem>>, vector<128x128xbf16>
    %c0_10 = arith.constant 0 : index
    %c0_11 = arith.constant 0 : index
    %11 = vector.load %arg5[%c0_10, %c0_11] : memref<1x128xf32, #tpu.memory_space<vmem>>, vector<1x128xf32>
    %cst_12 = arith.constant dense<0.000000e+00> : vector<128x128xf32>
    %12 = tpu.matmul %9, %10, %cst_12 {dimension_numbers = #tpu.dot_dimension_numbers<[1], [0], [0], [1], [0, 0, 1, 1], [], []>} : vector<128x128xbf16>, vector<128x128xbf16>, vector<128x128xf32> -> vector<128x128xf32>
    %13 = vector.broadcast %11 : vector<1x128xf32> to vector<128x128xf32>
    %14 = arith.addf %12, %13 : vector<128x128xf32>
    %c0_13 = arith.constant 0 : index
    %c0_14 = arith.constant 0 : index
    %15 = vector.load %arg7[%c0_13, %c0_14] : memref<128x128xf32, #tpu.memory_space<vmem>>, vector<128x128xf32>
    tpu.vector_store %arg7[%c0_13, %c0_14], %14 {strides = array<i32>} : memref<128x128xf32, #tpu.memory_space<vmem>>, vector<128x128xf32>,
    return
  }
  func.func @transform_0(%arg0: i32) -> (i32, i32) {
    %c0_i32 = arith.constant 0 : i32
    %c0_i32_0 = arith.constant 0 : i32
    return %arg0, %c0_i32 : i32, i32
  }
  func.func @transform_1(%arg0: i32) -> (i32, i32) {
    %c0_i32 = arith.constant 0 : i32
    %c0_i32_0 = arith.constant 0 : i32
    %c0_i32_1 = arith.constant 0 : i32
    return %c0_i32, %c0_i32_0 : i32, i32
  }
  func.func @transform_2(%arg0: i32) -> (i32, i32) {
    %c0_i32 = arith.constant 0 : i32
    %c0_i32_0 = arith.constant 0 : i32
    %c0_i32_1 = arith.constant 0 : i32
    return %c0_i32, %c0_i32_0 : i32, i32
  }
  func.func @transform_3(%arg0: i32) -> (i32, i32) {
    %c0_i32 = arith.constant 0 : i32
    %c0_i32_0 = arith.constant 0 : i32
    %c0_i32_1 = arith.constant 0 : i32
    return %c0_i32, %c0_i32_0 : i32, i32
  }
  func.func @transform_4(%arg0: i32) -> (i32, i32) {
    %c0_i32 = arith.constant 0 : i32
    %c0_i32_0 = arith.constant 0 : i32
    %c0_i32_1 = arith.constant 0 : i32
    return %c0_i32, %c0_i32_0 : i32, i32
  }
  func.func @transform_5(%arg0: i32) -> (i32, i32) {
    %c0_i32 = arith.constant 0 : i32
    %c0_i32_0 = arith.constant 0 : i32
    return %arg0, %c0_i32 : i32, i32
  }
  func.func @transform_6(%arg0: i32) -> (i32, i32) {
    %c0_i32 = arith.constant 0 : i32
    %c0_i32_0 = arith.constant 0 : i32
    return %arg0, %c0_i32 : i32, i32
  }
}

</mosaic_0001>

<bundles_post_ra>
// kernel: tpu_custom_call.1
= control target key start
LH: loop header
LB: loop body
LE: loop exit
PB: predicated region body
PF: predicated region fallthrough
CT: control target
= control target key end

     0   :  { %12 = vsyncpa [#allocation3], 0  ;;  %s979_s0 = inlined_call_operand.hbm [shape: bf16[128,128], index: 0, kind: input, shape index: {}]   ;;  %s980_s1 = inlined_call_operand.hbm [shape: bf16[128,128], index: 1, kind: input, shape index: {}]   ;;  %s981_s2 = inlined_call_operand.vmem [shape: f32[1,128], index: 2, kind: input, shape index: {}]   ;;  %s982_s3 = inlined_call_operand.hbm [shape: bf16[128,128], index: 3, kind: input, shape index: {}]   ;;  %s983_s4 = inlined_call_operand.vmem [shape: f32[1,128], index: 4, kind: input, shape index: {}]   ;;  %s984_s5 = inlined_call_operand.hbm [shape: f32[128,128], index: 5, kind: output, shape index: {0}]   ;;  %s985_s6 = inlined_call_operand.hbm [shape: f32[128,128], index: 6, kind: output, shape index: {1}]  }
   0x1   :  { %13 = vsyncpa [#allocation6], 0 }
   0x2   :  { %14 = vsyncpa [#allocation4], 0 }
   0x3   :  { %15 = vsyncpa [#allocation10], 0  ;;  %s829_s21 = smov [#allocation5]   ;;  %s830_s23 = smov [#allocation2]  }
   0x4   :  { %s33_s22 = sshll.u32 %s829_s21, 4  ;;  %s21_s24 = sshll.u32 %s830_s23, 4  ;;  %s34_s22 = int_to_ptr.vmem [resolvable:$true] %s33_s22  ;;  %s873_s24 = int_to_ptr.vmem [resolvable:$true] %s21_s24 }
   0x5   :  { %s711_s27 = scalar_lea.hbm %s980_s1, 1024 }
   0x6   :  { %p712_p0 = scmp.ne.s32.totalorder %s980_s1, %s711_s27  ;;  %p715_p1 = scmp.lt.u32.totalorder %s711_s27, %s980_s1 }
   0x8   :  { %p717_p2 = pnand %p715_p1, %p712_p0 }
   0xa   :  { %720 = shalt.err (!%p717_p2)
}
   0xb   :  { %s721_s8 = scalar_lea.vmem %s34_s22, 1024  ;;  %p726_p4 = scmp.lt.s32.totalorder %s34_s22, %s34_s22 }
   0xc   :  { %p722_p3 = scmp.ne.s32.totalorder %s34_s22, %s721_s8  ;;  %p727_p5 = scmp.lt.s32.totalorder %s721_s8, %s721_s8 }
   0xe   :  { %p728_p6 = por %p727_p5, %p726_p4 }
  0x10   :  { %p729_p7 = pnand %p728_p6, %p722_p3 }
  0x12   :  { %732 = shalt.err (!%p729_p7)
}
  0x13   :  { %s831_s9 = smov 64   ;;  %s832_s10 = smov 4  }
  0x14   :  { %39 = dma.hbm_to_vmem [thread:$0]  %s980_s1, 1024, %s34_s22, [#allocation6], %s831_s9, %s831_s9, %s832_s10  }
  0x15   :  { %s733_s15 = scalar_lea.hbm %s979_s0, 1024 }
  0x16   :  { %p734_p8 = scmp.ne.s32.totalorder %s979_s0, %s733_s15  ;;  %p737_p9 = scmp.lt.u32.totalorder %s733_s15, %s979_s0 }
  0x18   :  { %p739_p10 = pnand %p737_p9, %p734_p8 }
  0x1a   :  { %742 = shalt.err (!%p739_p10)
}
  0x1b   :  { %s743_s20 = scalar_lea.vmem %s873_s24, 1024  ;;  %p748_p12 = scmp.lt.s32.totalorder %s873_s24, %s873_s24 }
  0x1c   :  { %p744_p11 = scmp.ne.s32.totalorder %s873_s24, %s743_s20  ;;  %p749_p13 = scmp.lt.s32.totalorder %s743_s20, %s743_s20 }
  0x1e   :  { %p750_p0 = por %p749_p13, %p748_p12 }
  0x20   :  { %p751_p1 = pnand %p750_p0, %p744_p11 }
  0x22   :  { %754 = shalt.err (!%p751_p1)
}
  0x23   :  { %27 = dma.hbm_to_vmem [thread:$0]  %s979_s0, 1024, %s873_s24, [#allocation3], %s831_s9, %s831_s9, %s832_s10  }
  0x24   :  { %s833_s22 = smov [#allocation7]   ;;  %s755_s27 = scalar_lea.hbm %s982_s3, 1024 }
  0x25   :  { %s47_s23 = sshll.u32 %s833_s22, 4  ;;  %p756_p2 = scmp.ne.s32.totalorder %s982_s3, %s755_s27  ;;  %s48_s23 = int_to_ptr.vmem [resolvable:$true] %s47_s23 }
  0x26   :  { %p759_p3 = scmp.lt.u32.totalorder %s755_s27, %s982_s3 }
  0x28   :  { %p761_p4 = pnand %p759_p3, %p756_p2 }
  0x2a   :  { %764 = shalt.err (!%p761_p4)
}
  0x2b   :  { %s765_s8 = scalar_lea.vmem %s48_s23, 1024  ;;  %p770_p6 = scmp.lt.s32.totalorder %s48_s23, %s48_s23 }
  0x2c   :  { %p766_p5 = scmp.ne.s32.totalorder %s48_s23, %s765_s8  ;;  %p771_p7 = scmp.lt.s32.totalorder %s765_s8, %s765_s8 }
  0x2e   :  { %p772_p8 = por %p771_p7, %p770_p6 }
  0x30   :  { %p773_p9 = pnand %p772_p8, %p766_p5 }
  0x32   :  { %776 = shalt.err (!%p773_p9)
}
  0x33   :  { %53 = dma.hbm_to_vmem [thread:$0]  %s982_s3, 1024, %s48_s23, [#allocation6], %s831_s9, %s831_s9, %s832_s10  }
  0x34   :  { %821 = dma.done.wait [#allocation3], 1024  }
  0x35   :  { %822 = vsyncadd [#allocation3], 4294966272 }
  0x36   :  { %823 = dma.done.wait [#allocation6], 2048  }
  0x37   :  { %824 = vsyncadd [#allocation6], 4294965248  ;;  %v687_v0 = vld [vmem:[#allocation5] sm:$0xff]   ;;  %v688_v1 = vld [vmem:[#allocation5 + $0x8] sm:$0xff]  }
  0x38   :  { %614 = vmatprep.subr.bf16.mxu0 %v687_v0  ;;  %v689_v2 = vld [vmem:[#allocation5 + $0x10] sm:$0xff]   ;;  %v690_v3 = vld [vmem:[#allocation5 + $0x18] sm:$0xff]   ;;  %v695_v4 = vld [vmem:[#allocation2] sm:$0xff]  }
  0x39   :  { %615 = vmatpush3.bf16.msra.mxu0 %v687_v0  ;;  %630 = vmatprep.mubr.bf16.mxu0 %v695_v4  ;;  %v691_v5 = vld [vmem:[#allocation5 + $0x20] sm:$0xff]   ;;  %v692_v6 = vld [vmem:[#allocation5 + $0x28] sm:$0xff]   ;;  %v693_v9 = vld [vmem:[#allocation5 + $0x30] sm:$0xff]  }
  0x3a   :  { %616 = vmatprep.subr.bf16.mxu0 %v688_v1  ;;  %v703_v7 = vld [vmem:[#allocation7] sm:$0xff]   ;;  %v704_v8 = vld [vmem:[#allocation7 + $0x8] sm:$0xff]   ;;  %v705_v10 = vld [vmem:[#allocation7 + $0x10] sm:$0xff]  }
  0x3b   :  { %646 = vmatprep.subr.bf16.mxu1 %v703_v7  ;;  %v694_v11 = vld [vmem:[#allocation5 + $0x38] sm:$0xff]   ;;  %v707_v13 = vld [vmem:[#allocation7 + $0x20] sm:$0xff]   ;;  %v696_v14 = vld [vmem:[#allocation2 + $0x8] sm:$0xff]  }
  0x3c   :  { %647 = vmatpush3.bf16.msra.mxu1 %v703_v7  ;;  %v706_v12 = vld [vmem:[#allocation7 + $0x18] sm:$0xff]   ;;  %v697_v15 = vld [vmem:[#allocation2 + $0x10] sm:$0xff]   ;;  %v708_v16 = vld [vmem:[#allocation7 + $0x28] sm:$0xff]  }
  0x3d   :  { %617 = vmatpush3.bf16.msra.mxu0 %v688_v1  ;;  %648 = vmatprep.subr.bf16.mxu1 %v704_v8  ;;  %v698_v17 = vld [vmem:[#allocation2 + $0x18] sm:$0xff]   ;;  %v699_v18 = vld [vmem:[#allocation2 + $0x20] sm:$0xff]   ;;  %v700_v19 = vld [vmem:[#allocation2 + $0x28] sm:$0xff]  }
  0x3e   :  { %618 = vmatprep.subr.bf16.mxu0 %v689_v2  ;;  %v701_v20 = vld [vmem:[#allocation2 + $0x30] sm:$0xff]   ;;  %v702_v21 = vld [vmem:[#allocation2 + $0x38] sm:$0xff]   ;;  %v928_v24 = vld [vmem:[%s981_s2] ss:$0 sm:$0xff]  ;;  %s834_s2 = smov [#allocation8]  }
  0x3f   :  { %v709_v22 = vld [vmem:[#allocation7 + $0x30] sm:$0xff]   ;;  %v710_v23 = vld [vmem:[#allocation7 + $0x38] sm:$0xff]   ;;  %s527_s10 = sshll.u32 %s834_s2, 4  ;;  %s528_s10 = int_to_ptr.vmem [resolvable:$true] %s527_s10 }
  0x40   :  { %649 = vmatpush3.bf16.msra.mxu1 %v704_v8  ;;  %s777_s11 = scalar_lea.vmem %s528_s10, 2048  ;;  %p782_p11 = scmp.lt.s32.totalorder %s528_s10, %s528_s10 }
  0x41   :  { %619 = vmatpush3.bf16.msra.mxu0 %v689_v2  ;;  %650 = vmatprep.subr.bf16.mxu1 %v705_v10  ;;  %p778_p10 = scmp.ne.s32.totalorder %s528_s10, %s777_s11  ;;  %p783_p12 = scmp.lt.s32.totalorder %s777_s11, %s777_s11 }
  0x42   :  { %620 = vmatprep.subr.bf16.mxu0 %v690_v3 }
  0x43   :  { %p784_p13 = por %p783_p12, %p782_p11 }
  0x44   :  { %651 = vmatpush3.bf16.msra.mxu1 %v705_v10 }
  0x45   :  { %621 = vmatpush3.bf16.msra.mxu0 %v690_v3  ;;  %652 = vmatprep.subr.bf16.mxu1 %v706_v12  ;;  %p785_p0 = pnand %p784_p13, %p778_p10 }
  0x46   :  { %622 = vmatprep.subr.bf16.mxu0 %v691_v5 }
  0x48   :  { %653 = vmatpush3.bf16.msra.mxu1 %v706_v12 }
  0x49   :  { %623 = vmatpush3.bf16.msra.mxu0 %v691_v5  ;;  %654 = vmatprep.subr.bf16.mxu1 %v707_v13 }
  0x4a   :  { %624 = vmatprep.subr.bf16.mxu0 %v692_v6 }
  0x4c   :  { %655 = vmatpush3.bf16.msra.mxu1 %v707_v13 }
  0x4d   :  { %625 = vmatpush3.bf16.msra.mxu0 %v692_v6  ;;  %656 = vmatprep.subr.bf16.mxu1 %v708_v16 }
  0x4e   :  { %626 = vmatprep.subr.bf16.mxu0 %v693_v9 }
  0x50   :  { %657 = vmatpush3.bf16.msra.mxu1 %v708_v16 }
  0x51   :  { %627 = vmatpush3.bf16.msra.mxu0 %v693_v9  ;;  %658 = vmatprep.subr.bf16.mxu1 %v709_v22 }
  0x52   :  { %628 = vmatprep.subr.bf16.mxu0 %v694_v11 }
  0x54   :  { %659 = vmatpush3.bf16.msra.mxu1 %v709_v22 }
  0x55   :  { %629 = vmatpush3.bf16.msra.mxu0 %v694_v11  ;;  %660 = vmatprep.subr.bf16.mxu1 %v710_v23 }
  0x58   :  { %631 = vmatmul.mubr.bf16.vlgmr.msra.gmra.mrb[0].mxu0 %v696_v14  ;;  %661 = vmatpush3.bf16.msra.mxu1 %v710_v23 }
  0x59   :  { %634 = vmatprep.mubr.bf16.mxu0 %v697_v15 }
  0x60   :  { %635 = vmatmul.mubr.bf16.gmra.mrb[4].mxu0 %v698_v17 }
  0x61   :  { %638 = vmatprep.mubr.bf16.mxu0 %v699_v18 }
  0x68   :  { %639 = vmatmul.mubr.bf16.gmra.mrb[8].mxu0 %v700_v19 }
  0x69   :  { %642 = vmatprep.mubr.bf16.mxu0 %v701_v20 }
  0x70   :  { %643 = vmatmul.mubr.bf16.gmra.mrb[12].mxu0 %v702_v21 }
 0x12b   :  { %v632_v25 = vpop.f32.mrb[0].mxu0 }
 0x12c   :  { %v244_v26 = vadd.f32 %v632_v25, %v928_v24  ;;  %v235_v27 = vpop.f32.mrb[1].mxu0 }
 0x12d   :  { %v236_v28 = vadd.f32 %v928_v24, %v235_v27  ;;  %v633_v29 = vpop.f32.mrb[2].mxu0 }
 0x12e   :  { %300 = vst [vmem:[#allocation8 + $0x10] sm:$0xff] %v244_v26  ;;  %v247_v30 = vadd.f32 %v633_v29, %v928_v24  ;;  %v238_v31 = vpop.f32.mrb[3].mxu0  ;;  %v316_v33 = vmax.f32 %v244_v26, 0.0 }
 0x12f   :  { %298 = vst [vmem:[#allocation8] sm:$0xff] %v236_v28  ;;  %v239_v32 = vadd.f32 %v928_v24, %v238_v31  ;;  %v314_v35 = vmax.f32 %v236_v28, 0.0 }
 0x130   :  { %301 = vst [vmem:[#allocation8 + $0x18] sm:$0xff] %v247_v30  ;;  %v317_v34 = vmax.f32 %v247_v30, 0.0 }
 0x131   :  { %299 = vst [vmem:[#allocation8 + $0x8] sm:$0xff] %v239_v32  ;;  %v315_v36 = vmax.f32 %v239_v32, 0.0 }
 0x132   :  { %v331_v37 = vpack.c.bf16 %v317_v34, %v316_v33 }
 0x133   :  { %v636_v38 = vpop.f32.mrb[4].mxu0  ;;  %v330_v39 = vpack.c.bf16 %v315_v36, %v314_v35 }
 0x134   :  { %v260_v40 = vadd.f32 %v636_v38, %v928_v24  ;;  %v251_v41 = vpop.f32.mrb[5].mxu0 }
 0x135   :  { %v252_v42 = vadd.f32 %v928_v24, %v251_v41  ;;  %v637_v43 = vpop.f32.mrb[6].mxu0  ;;  %662 = vmatprep.mubr.bf16.mxu1 %v330_v39 }
 0x136   :  { %304 = vst [vmem:[#allocation8 + $0x30] sm:$0xff] %v260_v40  ;;  %v263_v44 = vadd.f32 %v637_v43, %v928_v24  ;;  %v254_v45 = vpop.f32.mrb[7].mxu0  ;;  %663 = vmatmul.mubr.bf16.vlgmr.msra.gmra.mrb[0].mxu1 %v331_v37  ;;  %v320_v47 = vmax.f32 %v260_v40, 0.0 }
 0x137   :  { %302 = vst [vmem:[#allocation8 + $0x20] sm:$0xff] %v252_v42  ;;  %v255_v46 = vadd.f32 %v928_v24, %v254_v45  ;;  %v318_v49 = vmax.f32 %v252_v42, 0.0 }
 0x138   :  { %305 = vst [vmem:[#allocation8 + $0x38] sm:$0xff] %v263_v44  ;;  %v321_v48 = vmax.f32 %v263_v44, 0.0 }
 0x139   :  { %303 = vst [vmem:[#allocation8 + $0x28] sm:$0xff] %v255_v46  ;;  %v319_v50 = vmax.f32 %v255_v46, 0.0 }
 0x13a   :  { %v333_v51 = vpack.c.bf16 %v321_v48, %v320_v47 }
 0x13b   :  { %v640_v52 = vpop.f32.mrb[8].mxu0  ;;  %v332_v53 = vpack.c.bf16 %v319_v50, %v318_v49 }
 0x13c   :  { %v276_v54 = vadd.f32 %v640_v52, %v928_v24  ;;  %v267_v55 = vpop.f32.mrb[9].mxu0 }
 0x13d   :  { %v268_v56 = vadd.f32 %v928_v24, %v267_v55  ;;  %v641_v57 = vpop.f32.mrb[10].mxu0  ;;  %666 = vmatprep.mubr.bf16.mxu1 %v332_v53 }
 0x13e   :  { %308 = vst [vmem:[#allocation8 + $0x50] sm:$0xff] %v276_v54  ;;  %v279_v58 = vadd.f32 %v641_v57, %v928_v24  ;;  %v270_v59 = vpop.f32.mrb[11].mxu0  ;;  %667 = vmatmul.mubr.bf16.gmra.mrb[4].mxu1 %v333_v51  ;;  %v324_v61 = vmax.f32 %v276_v54, 0.0 }
 0x13f   :  { %306 = vst [vmem:[#allocation8 + $0x40] sm:$0xff] %v268_v56  ;;  %v271_v60 = vadd.f32 %v928_v24, %v270_v59  ;;  %v322_v63 = vmax.f32 %v268_v56, 0.0 }
 0x140   :  { %309 = vst [vmem:[#allocation8 + $0x58] sm:$0xff] %v279_v58  ;;  %v325_v62 = vmax.f32 %v279_v58, 0.0 }
 0x141   :  { %307 = vst [vmem:[#allocation8 + $0x48] sm:$0xff] %v271_v60  ;;  %v323_v0 = vmax.f32 %v271_v60, 0.0 }
 0x142   :  { %v335_v1 = vpack.c.bf16 %v325_v62, %v324_v61 }
 0x143   :  { %v644_v2 = vpop.f32.mrb[12].mxu0  ;;  %v334_v3 = vpack.c.bf16 %v323_v0, %v322_v63 }
 0x144   :  { %v292_v4 = vadd.f32 %v644_v2, %v928_v24  ;;  %v283_v5 = vpop.f32.mrb[13].mxu0 }
 0x145   :  { %v284_v6 = vadd.f32 %v928_v24, %v283_v5  ;;  %v645_v7 = vpop.f32.mrb[14].mxu0  ;;  %670 = vmatprep.mubr.bf16.mxu1 %v334_v3 }
 0x146   :  { %312 = vst [vmem:[#allocation8 + $0x70] sm:$0xff] %v292_v4  ;;  %v295_v8 = vadd.f32 %v645_v7, %v928_v24  ;;  %v286_v9 = vpop.f32.mrb[15].mxu0  ;;  %671 = vmatmul.mubr.bf16.gmra.mrb[8].mxu1 %v335_v1  ;;  %v328_v11 = vmax.f32 %v292_v4, 0.0 }
 0x147   :  { %310 = vst [vmem:[#allocation8 + $0x60] sm:$0xff] %v284_v6  ;;  %v287_v10 = vadd.f32 %v928_v24, %v286_v9  ;;  %v326_v13 = vmax.f32 %v284_v6, 0.0 }
 0x148   :  { %313 = vst [vmem:[#allocation8 + $0x78] sm:$0xff] %v295_v8  ;;  %v329_v12 = vmax.f32 %v295_v8, 0.0 }
 0x149   :  { %311 = vst [vmem:[#allocation8 + $0x68] sm:$0xff] %v287_v10  ;;  %v327_v14 = vmax.f32 %v287_v10, 0.0 }
 0x14a   :  { %v337_v15 = vpack.c.bf16 %v329_v12, %v328_v11 }
 0x14b   :  { %v336_v16 = vpack.c.bf16 %v327_v14, %v326_v13 }
 0x14d   :  { %674 = vmatprep.mubr.bf16.mxu1 %v336_v16 }
 0x14e   :  { %675 = vmatmul.mubr.bf16.gmra.mrb[12].mxu1 %v337_v15 }
 0x14f   :  { %788 = shalt.err (!%p785_p0)
}
 0x150   :  { %s789_s14 = scalar_lea.hbm %s984_s5, 2048 }
 0x151   :  { %p790_p1 = scmp.ne.s32.totalorder %s984_s5, %s789_s14  ;;  %p793_p2 = scmp.lt.u32.totalorder %s789_s14, %s984_s5 }
 0x153   :  { %p795_p3 = pnand %p793_p2, %p790_p1 }
 0x155   :  { %798 = shalt.err (!%p795_p3)
}
 0x156   :  { %s835_s19 = smov 128   ;;  %s836_s20 = smov 8   ;;  %v573_v17 = vld [vmem:[%s983_s4] ss:$0 sm:$0xff] }
 0x157   :  { %533 = dma.vmem_to_hbm [thread:$0]  %s528_s10, 2048, %s984_s5, [#allocation4], %s835_s19, %s835_s19, %s836_s20  }
 0x158   :  { %s837_s4 = smov [#allocation9]  }
 0x159   :  { %s539_s5 = sshll.u32 %s837_s4, 4  ;;  %s540_s5 = int_to_ptr.vmem [resolvable:$true] %s539_s5 }
 0x15a   :  { %s799_s25 = scalar_lea.vmem %s540_s5, 2048  ;;  %p804_p5 = scmp.lt.s32.totalorder %s540_s5, %s540_s5 }
 0x15b   :  { %p800_p4 = scmp.ne.s32.totalorder %s540_s5, %s799_s25  ;;  %p805_p6 = scmp.lt.s32.totalorder %s799_s25, %s799_s25 }
 0x15d   :  { %p806_p7 = por %p805_p6, %p804_p5 }
 0x15f   :  { %p807_p8 = pnand %p806_p7, %p800_p4 }
 0x209   :  { %v664_v18 = vpop.f32.mrb[0].mxu1 }
 0x20a   :  { %v452_v19 = vadd.f32 %v664_v18, %v573_v17  ;;  %v443_v20 = vpop.f32.mrb[1].mxu1 }
 0x20b   :  { %v444_v21 = vadd.f32 %v573_v17, %v443_v20  ;;  %v665_v22 = vpop.f32.mrb[2].mxu1 }
 0x20c   :  { %508 = vst [vmem:[#allocation9 + $0x10] sm:$0xff] %v452_v19  ;;  %v455_v23 = vadd.f32 %v665_v22, %v573_v17  ;;  %v446_v24 = vpop.f32.mrb[3].mxu1 }
 0x20d   :  { %506 = vst [vmem:[#allocation9] sm:$0xff] %v444_v21  ;;  %v447_v25 = vadd.f32 %v573_v17, %v446_v24 }
 0x20e   :  { %509 = vst [vmem:[#allocation9 + $0x18] sm:$0xff] %v455_v23 }
 0x20f   :  { %507 = vst [vmem:[#allocation9 + $0x8] sm:$0xff] %v447_v25 }
 0x211   :  { %v668_v26 = vpop.f32.mrb[4].mxu1 }
 0x212   :  { %v468_v27 = vadd.f32 %v668_v26, %v573_v17  ;;  %v459_v28 = vpop.f32.mrb[5].mxu1 }
 0x213   :  { %v460_v29 = vadd.f32 %v573_v17, %v459_v28  ;;  %v669_v30 = vpop.f32.mrb[6].mxu1 }
 0x214   :  { %512 = vst [vmem:[#allocation9 + $0x30] sm:$0xff] %v468_v27  ;;  %v471_v31 = vadd.f32 %v669_v30, %v573_v17  ;;  %v462_v32 = vpop.f32.mrb[7].mxu1 }
 0x215   :  { %510 = vst [vmem:[#allocation9 + $0x20] sm:$0xff] %v460_v29  ;;  %v463_v33 = vadd.f32 %v573_v17, %v462_v32 }
 0x216   :  { %513 = vst [vmem:[#allocation9 + $0x38] sm:$0xff] %v471_v31 }
 0x217   :  { %511 = vst [vmem:[#allocation9 + $0x28] sm:$0xff] %v463_v33 }
 0x219   :  { %v672_v34 = vpop.f32.mrb[8].mxu1 }
 0x21a   :  { %v484_v35 = vadd.f32 %v672_v34, %v573_v17  ;;  %v475_v36 = vpop.f32.mrb[9].mxu1 }
 0x21b   :  { %v476_v37 = vadd.f32 %v573_v17, %v475_v36  ;;  %v673_v38 = vpop.f32.mrb[10].mxu1 }
 0x21c   :  { %516 = vst [vmem:[#allocation9 + $0x50] sm:$0xff] %v484_v35  ;;  %v487_v39 = vadd.f32 %v673_v38, %v573_v17  ;;  %v478_v40 = vpop.f32.mrb[11].mxu1 }
 0x21d   :  { %514 = vst [vmem:[#allocation9 + $0x40] sm:$0xff] %v476_v37  ;;  %v479_v41 = vadd.f32 %v573_v17, %v478_v40 }
 0x21e   :  { %517 = vst [vmem:[#allocation9 + $0x58] sm:$0xff] %v487_v39 }
 0x21f   :  { %515 = vst [vmem:[#allocation9 + $0x48] sm:$0xff] %v479_v41 }
 0x221   :  { %v676_v42 = vpop.f32.mrb[12].mxu1 }
 0x222   :  { %v500_v43 = vadd.f32 %v676_v42, %v573_v17  ;;  %v491_v44 = vpop.f32.mrb[13].mxu1 }
 0x223   :  { %v492_v45 = vadd.f32 %v573_v17, %v491_v44  ;;  %v677_v46 = vpop.f32.mrb[14].mxu1 }
 0x224   :  { %520 = vst [vmem:[#allocation9 + $0x70] sm:$0xff] %v500_v43  ;;  %v503_v47 = vadd.f32 %v677_v46, %v573_v17  ;;  %v494_v48 = vpop.f32.mrb[15].mxu1 }
 0x225   :  { %518 = vst [vmem:[#allocation9 + $0x60] sm:$0xff] %v492_v45  ;;  %v495_v49 = vadd.f32 %v573_v17, %v494_v48 }
 0x226   :  { %521 = vst [vmem:[#allocation9 + $0x78] sm:$0xff] %v503_v47 }
 0x227   :  { %519 = vst [vmem:[#allocation9 + $0x68] sm:$0xff] %v495_v49 }
 0x228   :  { %810 = shalt.err (!%p807_p8)
}
 0x229   :  { %s811_s28 = scalar_lea.hbm %s985_s6, 2048 }
 0x22a   :  { %p812_p9 = scmp.ne.s32.totalorder %s985_s6, %s811_s28  ;;  %p815_p10 = scmp.lt.u32.totalorder %s811_s28, %s985_s6 }
 0x22c   :  { %p817_p11 = pnand %p815_p10, %p812_p9 }
 0x22e   :  { %820 = shalt.err (!%p817_p11)
}
 0x22f   :  { %545 = dma.vmem_to_hbm [thread:$0]  %s540_s5, 2048, %s985_s6, [#allocation10], %s835_s19, %s835_s19, %s836_s20  }
 0x230   :  { %825 = dma.done.wait [#allocation4], 2048  }
 0x231   :  { %826 = vsyncadd [#allocation4], 4294965248 }
 0x232   :  { %827 = dma.done.wait [#allocation10], 2048  }
 0x233   :  { %828 = vsyncadd [#allocation10], 4294965248 }
 0x234   :  { %552 = vsyncpa [#allocation3], 1 }
 0x235   :  { %553 = vsyncpa [#allocation6], 1 }
 0x236   :  { %554 = vsyncpa [#allocation4], 1 }
 0x237   :  { %555 = vsyncpa [#allocation10], 1 }

</bundles_post_ra>
